<compile_context>
chip_gen: v7x
topology: tpu7x:2x2x1
jax: 0.10.0
libtpu: 0.0.40
codegen_flags: <defaults>
</compile_context>

<pallas_src>
import jax
import jax.numpy as jnp
from jax.experimental import pallas as pl
from jax.experimental.pallas import tpu as pltpu


_LANE = 128
# Below this the per-grid-step + custom-call overhead dominates; XLA's fused
# elementwise multiply wins, so fall back unless forced.
_PALLAS_MIN_BYTES = 1 << 20


def _sublane_multiple(itemsize):
    # Packed sublane granularity: 8 rows (f32), 16 (bf16/f16), 32 (int8/fp8).
    return max(8, 32 // max(1, itemsize))


def _chip_tuning():
    """Returns (block_budget_bytes, vmem_limit_bytes) for the local TPU gen."""
    kind = ""
    try:
        kind = jax.devices()[0].device_kind.lower()
    except Exception:
        pass
    if "v5 lite" in kind or "v5e" in kind or "v5lite" in kind:
        # v5e: 16 MiB scoped-VMEM default; ~2 MiB blocks already hide overhead
        # at ~820 GB/s.
        return 2 << 20, 32 << 20
    if "v6" in kind:
        # v6e: 128 MiB VMEM, ~4 MiB blocks reach ~86% of HBM roofline.
        return 4 << 20, 64 << 20
    # v7x (only 64 MiB physical VMEM) and unknown/future chips: bigger blocks
    # to amortize the ~0.35 us/step overhead at 3.2 TB/s, but keep the
    # double-buffered x+out footprint (~4x block) well under physical VMEM.
    return 4 << 20, 48 << 20


def _scale_kernel(x_ref, s_ref, o_ref):
    # x_ref: (tb, tf) tile; s_ref: (1, tf) row broadcast over the sublane axis.
    # Explicit cast keeps the store dtype correct if scale is kept in f32
    # while x/out are bf16.
    o_ref[...] = (x_ref[...] * s_ref[...]).astype(o_ref.dtype)


def scale_forward(x, scale, *, force_pallas=False):
    """Pallas implementation of Scale.forward: x * scale.expand_as(x).

    x:     (..., out_size)  -- leading dims are flattened into the batch axis.
    scale: (1, out_size) or (out_size,)
    """
    orig_shape = x.shape
    feat = orig_shape[-1]
    scale = scale.reshape(1, -1)
    assert scale.shape == (1, feat), (scale.shape, feat)

    x2 = x.reshape(-1, feat)
    batch = x2.shape[0]
    out_dtype = x.dtype
    itemsize = jnp.dtype(x2.dtype).itemsize

    # Tiny inputs: skip the kernel, let XLA fuse the multiply.
    if not force_pallas and x2.size * itemsize < _PALLAS_MIN_BYTES:
        return (x2 * scale).astype(out_dtype).reshape(orig_shape)

    block_budget, vmem_limit = _chip_tuning()
    sub = _sublane_multiple(itemsize)

    # Feature (lane) axis: prefer one full contiguous row per block.  Only
    # tile it when feat is a 128-multiple AND a minimal-height full-row block
    # would blow the block budget.  (A full-dim block is legal for any feat.)
    if feat % _LANE != 0 or sub * feat * itemsize <= block_budget:
        tf = feat
    else:
        tf = max(_LANE, (block_budget // (sub * itemsize)) // _LANE * _LANE)
        tf = min(tf, feat)

    # Batch (sublane) axis: multiple of the packed sublane granularity, sized
    # to the block budget.  No padding: partial edge blocks are masked by
    # Pallas (OOB input reads are harmless for this elementwise multiply,
    # OOB output stores are masked).
    if batch <= sub:
        tb = batch  # full-dim block, legal for any size
    else:
        target_tb = max(sub, (block_budget // (tf * itemsize)) // sub * sub)
        tb = min(target_tb, (batch // sub) * sub)

    grid = (pl.cdiv(batch, tb), pl.cdiv(feat, tf))

    cost = pl.CostEstimate(
        flops=batch * feat,
        transcendentals=0,
        bytes_accessed=2 * batch * feat * itemsize
        + feat * jnp.dtype(scale.dtype).itemsize,
    )

    out = pl.pallas_call(
        _scale_kernel,
        out_shape=jax.ShapeDtypeStruct((batch, feat), out_dtype),
        grid_spec=pl.GridSpec(
            grid=grid,
            in_specs=[
                pl.BlockSpec((tb, tf), lambda i, j: (i, j)),   # x tile
                pl.BlockSpec((1, tf), lambda i, j: (0, j)),    # scale row
            ],
            out_specs=pl.BlockSpec((tb, tf), lambda i, j: (i, j)),
        ),
        compiler_params=pltpu.CompilerParams(
            dimension_semantics=("parallel", "parallel"),
            vmem_limit_bytes=vmem_limit,
        ),
        cost_estimate=cost,
    )(x2, scale)

    return out.reshape(orig_shape)


if __name__ == "__main__":
    key = jax.random.PRNGKey(0)
    k1, k2, k3 = jax.random.split(key, 3)

    # Case 1: tiny shape matching the PyTorch module's typical use.
    # Forces the Pallas path (single full-dim block) so the kernel runs.
    batch, out_size = 4, 32
    initial_scale = 1.0
    x_small = jax.random.normal(k1, (batch, out_size), dtype=jnp.float32)
    # torch.ones(1, out_size).fill_(initial_scale)
    scale_small = jnp.full((1, out_size), initial_scale, dtype=jnp.float32)

    out_small = scale_forward(x_small, scale_small, force_pallas=True)
    jax.block_until_ready(out_small)
    ref_small = x_small * jnp.broadcast_to(scale_small, x_small.shape)
    assert out_small.shape == x_small.shape
    assert out_small.dtype == x_small.dtype
    assert jnp.allclose(out_small, ref_small), "small-case mismatch vs reference"

    # Case 2: larger, tile-aligned shape exercising full-row blocks and the
    # batch-tiled, auto-pipelined grid.
    big_b, big_f = 1024, 1024
    x_big = jax.random.normal(k2, (big_b, big_f), dtype=jnp.float32)
    scale_big = jnp.full((1, big_f), 0.5, dtype=jnp.float32)

    out_big = scale_forward(x_big, scale_big)
    jax.block_until_ready(out_big)
    ref_big = x_big * jnp.broadcast_to(scale_big, x_big.shape)
    assert out_big.shape == x_big.shape
    assert jnp.allclose(out_big, ref_big), "big-case mismatch vs reference"

    # Case 3: misaligned bf16 shape -- exercises the no-pad path (masked
    # partial edge block) and the per-dtype sublane rounding.
    odd_b, odd_f = 300, 200
    x_odd = jax.random.normal(k3, (odd_b, odd_f), dtype=jnp.bfloat16)
    scale_odd = jnp.full((1, odd_f), 2.0, dtype=jnp.bfloat16)

    out_odd = scale_forward(x_odd, scale_odd, force_pallas=True)
    jax.block_until_ready(out_odd)
    ref_odd = x_odd * jnp.broadcast_to(scale_odd, x_odd.shape)
    assert out_odd.shape == x_odd.shape
    assert out_odd.dtype == x_odd.dtype
    assert jnp.allclose(out_odd.astype(jnp.float32), ref_odd.astype(jnp.float32),
                        atol=1e-2, rtol=1e-2), "odd-case mismatch vs reference"

    print("KERNEL_OK")
</pallas_src>

<mosaic_0001>
module attributes {stable_mosaic.version = 11 : i64} {
  func.func @_scale_kernel(%arg0: i32, %arg1: i32, %arg2: memref<4x32xf32, #tpu.memory_space<vmem>>, %arg3: memref<1x32xf32, #tpu.memory_space<vmem>>, %arg4: memref<4x32xf32, #tpu.memory_space<vmem>>) attributes {dimension_semantics = [#tpu.dimension_semantics<parallel>, #tpu.dimension_semantics<parallel>], iteration_bounds = array<i64: 1, 1>, scalar_prefetch = 0 : i64, scratch_operands = 0 : i64, tpu.core_type = #tpu.core_type<tc>, window_params = [{transform_indices = @transform_0, window_bounds = array<i64: 4, 32>}, {transform_indices = @transform_1, window_bounds = array<i64: 1, 32>}, {transform_indices = @transform_2, window_bounds = array<i64: 4, 32>}]} {
    %c0 = arith.constant 0 : index
    %c0_0 = arith.constant 0 : index
    %0 = vector.load %arg2[%c0, %c0_0] : memref<4x32xf32, #tpu.memory_space<vmem>>, vector<4x32xf32>
    %c0_1 = arith.constant 0 : index
    %c0_2 = arith.constant 0 : index
    %1 = vector.load %arg3[%c0_1, %c0_2] : memref<1x32xf32, #tpu.memory_space<vmem>>, vector<1x32xf32>
    %2 = vector.broadcast %1 : vector<1x32xf32> to vector<4x32xf32>
    %3 = arith.mulf %0, %2 : vector<4x32xf32>
    %c0_3 = arith.constant 0 : index
    %c0_4 = arith.constant 0 : index
    %4 = vector.load %arg4[%c0_3, %c0_4] : memref<4x32xf32, #tpu.memory_space<vmem>>, vector<4x32xf32>
    tpu.vector_store %arg4[%c0_3, %c0_4], %3 {strides = array<i32>} : memref<4x32xf32, #tpu.memory_space<vmem>>, vector<4x32xf32>,
    return
  }
  func.func @transform_0(%arg0: i32, %arg1: i32) -> (i32, i32) {
    %c0_i32 = arith.constant 0 : i32
    return %arg0, %arg1 : i32, i32
  }
  func.func @transform_1(%arg0: i32, %arg1: i32) -> (i32, i32) {
    %c0_i32 = arith.constant 0 : i32
    %c0_i32_0 = arith.constant 0 : i32
    return %c0_i32, %arg1 : i32, i32
  }
  func.func @transform_2(%arg0: i32, %arg1: i32) -> (i32, i32) {
    %c0_i32 = arith.constant 0 : i32
    return %arg0, %arg1 : i32, i32
  }
}

</mosaic_0001>

<bundles_post_ra>
// kernel: tpu_custom_call.1
= control target key start
LH: loop header
LB: loop body
LE: loop exit
PB: predicated region body
PF: predicated region fallthrough
CT: control target
= control target key end

     0   :  { %7 = vsyncpa [#allocation3], 0  ;;  %s145_s0 = inlined_call_operand.hbm [shape: f32[4,32], index: 0, kind: input, shape index: {}]   ;;  %s146_s1 = inlined_call_operand.vmem [shape: f32[1,32], index: 1, kind: input, shape index: {}]   ;;  %s147_s2 = inlined_call_operand.hbm [shape: f32[4,32], index: 2, kind: output, shape index: {}]  }
   0x1   :  { %8 = vsyncpa [#allocation4], 0  ;;  %s101_s9 = smov [#allocation2]   ;;  %s53_s13 = scalar_lea.hbm %s145_s0, 64 }
   0x2   :  { %s15_s10 = sshll.u32 %s101_s9, 4  ;;  %p54_p0 = scmp.ne.s32.totalorder %s145_s0, %s53_s13  ;;  %s16_s10 = int_to_ptr.vmem [resolvable:$true] %s15_s10 }
   0x3   :  { %p57_p1 = scmp.lt.u32.totalorder %s53_s13, %s145_s0 }
   0x5   :  { %p59_p2 = pnand %p57_p1, %p54_p0 }
   0x7   :  { %62 = shalt.err (!%p59_p2)
}
   0x8   :  { %s63_s18 = scalar_lea.vmem %s16_s10, 64  ;;  %p68_p4 = scmp.lt.s32.totalorder %s16_s10, %s16_s10 }
   0x9   :  { %p64_p3 = scmp.ne.s32.totalorder %s16_s10, %s63_s18  ;;  %p69_p5 = scmp.lt.s32.totalorder %s63_s18, %s63_s18 }
   0xb   :  { %p70_p6 = por %p69_p5, %p68_p4 }
   0xd   :  { %p71_p7 = pnand %p70_p6, %p64_p3 }
   0xf   :  { %74 = shalt.err (!%p71_p7)
}
  0x10   :  { %18 = dma.hbm_to_vmem [thread:$0]  %s145_s0, 64, %s16_s10, [#allocation3]  }
  0x11   :  { %97 = dma.done.wait [#allocation3], 64  }
  0x12   :  { %98 = vsyncadd [#allocation3], 4294967232  ;;  %s102_s21 = smov [#allocation5]   ;;  %v24_v0 = vld [vmem:[#allocation2] sm:$0xf]  ;;  %vm33_vm0 = vcmask 257024  }
  0x13   :  { %s41_s22 = sshll.u32 %s102_s21, 4  ;;  %v50_v1 = vld [vmem:[%s146_s1] ss:$0 sm:$0xff]  ;;  %s42_s22 = int_to_ptr.vmem [resolvable:$true] %s41_s22 }
  0x14   :  { %v32_v2 = vmul.f32 %v50_v1, %v24_v0  ;;  %s75_s25 = scalar_lea.vmem %s42_s22, 64  ;;  %p80_p9 = scmp.lt.s32.totalorder %s42_s22, %s42_s22 }
  0x15   :  { %p76_p8 = scmp.ne.s32.totalorder %s42_s22, %s75_s25  ;;  %p81_p10 = scmp.lt.s32.totalorder %s75_s25, %s75_s25 }
  0x16   :  { %34 = vst.msk [vmem:[#allocation5] sm:$0xf] %vm33_vm0, %v32_v2 }
  0x17   :  { %p82_p11 = por %p81_p10, %p80_p9 }
  0x19   :  { %p83_p12 = pnand %p82_p11, %p76_p8 }
  0x1b   :  { %86 = shalt.err (!%p83_p12)
}
  0x1c   :  { %s87_s27 = scalar_lea.hbm %s147_s2, 64 }
  0x1d   :  { %p88_p13 = scmp.ne.s32.totalorder %s147_s2, %s87_s27  ;;  %p91_p0 = scmp.lt.u32.totalorder %s87_s27, %s147_s2 }
  0x1f   :  { %p93_p1 = pnand %p91_p0, %p88_p13 }
  0x21   :  { %96 = shalt.err (!%p93_p1)
}
  0x22   :  { %44 = dma.vmem_to_hbm [thread:$0]  %s42_s22, 64, %s147_s2, [#allocation4]  }
  0x23   :  { %99 = dma.done.wait [#allocation4], 64  }
  0x24   :  { %100 = vsyncadd [#allocation4], 4294967232 }
  0x25   :  { %48 = vsyncpa [#allocation3], 1 }
  0x26   :  { %49 = vsyncpa [#allocation4], 1 }

</bundles_post_ra>
